<compile_context>
chip_gen: v7x
topology: tpu7x:2x2x1
jax: 0.10.0
libtpu: 0.0.40
codegen_flags: <defaults>
</compile_context>

<pallas_src>
import jax
import jax.numpy as jnp
from jax.experimental import pallas as pl
from jax.experimental.pallas import tpu as pltpu

NUM_KNOTS = 10
DEGREE = 3
NUM_BASIS = NUM_KNOTS - 1 - DEGREE  # 6
LANES = 128
MAX_BLOCK_ROWS = 2048  # (2048,128) f32 = 1 MiB/block; 2x(in+out) = 4 MiB total.


def _round_up(a, b):
    return ((a + b - 1) // b) * b


def spline_kernel(a_ref, c_ref, coeffs_ref, x_ref, o_ref):
    """Elementwise B-spline-like basis evaluation + weighted sum.

    a_ref      : SMEM (NUM_BASIS*DEGREE,)  -- 1/(knots[j+i]-knots[j])
    c_ref      : SMEM (NUM_BASIS*DEGREE,)  -- -knots[j]/(knots[j+i]-knots[j])
    coeffs_ref : SMEM (NUM_BASIS,)         -- spline coefficients
    x_ref      : VMEM (block_rows, LANES)  -- input tile
    o_ref      : VMEM (block_rows, LANES)  -- output tile

    Fully unrolled 6x3 clip/mul chain, pure VPU work in fused x*a + c form.
    First iterations initialize b / out directly (no ones/zeros splats).
    """
    x = x_ref[...]
    out = None
    for j in range(NUM_BASIS):
        b = None
        for i in range(DEGREE):
            s = j * DEGREE + i
            t = jnp.clip(x * a_ref[s] + c_ref[s], 0.0, 1.0)
            b = t if b is None else b * t
        term = b * coeffs_ref[j]
        out = term if out is None else out + term
    o_ref[...] = out


def adaptive_spline(x, knots, coeffs):
    """Pallas wrapper. x: (N,) f32, knots: (NUM_KNOTS,), coeffs: (NUM_KNOTS,)."""
    n = x.shape[0]
    rows = _round_up(n, LANES) // LANES

    # Block sizing: aim for >=2 grid steps when there's enough work (so v7x
    # can shard across its two TensorCores), cap block at 1 MiB.
    block_rows = min(MAX_BLOCK_ROWS, _round_up(max((rows + 1) // 2, 8), 8))
    rows_padded = _round_up(rows, block_rows)
    n_padded = rows_padded * LANES

    xf = x.astype(jnp.float32)
    if n_padded != n:
        xf = jnp.pad(xf, (0, n_padded - n))  # padded tail is sliced off below
    x2 = xf.reshape(rows_padded, LANES)

    # Precompute tiny scalar tables in plain JAX (glue, not the hot path).
    knots_f = knots.astype(jnp.float32)
    coeffs_f = coeffs.astype(jnp.float32)
    kj = knots_f[:NUM_BASIS]                                      # (6,)
    denom = jnp.stack(
        [knots_f[1 + i:NUM_BASIS + 1 + i] - kj for i in range(DEGREE)],
        axis=1)                                                   # (6, 3)
    # Guard against coincident (adaptive) knots producing inf/NaN; no-op for
    # strictly monotone knots like the default linspace init.
    denom = jnp.where(jnp.abs(denom) < 1e-8,
                      jnp.where(denom < 0, -1e-8, 1e-8), denom)
    a = 1.0 / denom                                               # (6, 3)
    c = -kj[:, None] * a                                          # (6, 3)
    a_flat = a.reshape(-1)                                        # (18,)
    c_flat = c.reshape(-1)                                        # (18,)
    coeffs_j = coeffs_f[:NUM_BASIS]                               # (6,)

    grid = (rows_padded // block_rows,)
    out2 = pl.pallas_call(
        spline_kernel,
        out_shape=jax.ShapeDtypeStruct((rows_padded, LANES), jnp.float32),
        grid=grid,
        in_specs=[
            pl.BlockSpec(memory_space=pltpu.MemorySpace.SMEM),   # a (scale)
            pl.BlockSpec(memory_space=pltpu.MemorySpace.SMEM),   # c (offset)
            pl.BlockSpec(memory_space=pltpu.MemorySpace.SMEM),   # coeffs
            pl.BlockSpec((block_rows, LANES), lambda r: (r, 0)),  # x tile
        ],
        out_specs=pl.BlockSpec((block_rows, LANES), lambda r: (r, 0)),
        compiler_params=pltpu.CompilerParams(
            dimension_semantics=("parallel",)),
    )(a_flat, c_flat, coeffs_j, x2)
    return out2.reshape(n_padded)[:n]


def adaptive_spline_ref(x, knots, coeffs):
    """Pure-JAX reference (same broadcast-consistent semantics)."""
    xb = x[:, None].astype(jnp.float32)  # (n, 1)
    cols = []
    for j in range(NUM_BASIS):
        t = (xb - knots[j]) / (knots[j + 1:j + DEGREE + 1] - knots[j])  # (n, 3)
        cols.append(jnp.prod(jnp.clip(t, 0.0, 1.0), axis=1))
    basis = jnp.stack(cols, axis=1)          # (n, NUM_BASIS)
    return jnp.sum(basis * coeffs[:NUM_BASIS], axis=-1)


if __name__ == "__main__":
    N = 2000  # small, deliberately not a multiple of 1024 (exercises padding)

    # Deterministic parameter init (mirrors nn.Module __init__ shapes).
    knots = jnp.linspace(-1.0, 1.0, NUM_KNOTS).astype(jnp.float32)        # (10,)
    coeffs = jax.random.normal(jax.random.PRNGKey(1), (NUM_KNOTS,),
                               dtype=jnp.float32)                         # (10,)

    # Deterministic example input.
    x = 0.75 * jax.random.normal(jax.random.PRNGKey(0), (N,), dtype=jnp.float32)

    out = jax.block_until_ready(adaptive_spline(x, knots, coeffs))

    ref = adaptive_spline_ref(x, knots, coeffs)
    assert out.shape == (N,) and out.dtype == jnp.float32
    assert jnp.allclose(out, ref, atol=1e-5, rtol=1e-5)

    print("KERNEL_OK")
</pallas_src>

<mosaic_0001>
module attributes {stable_mosaic.version = 11 : i64} {
  func.func @spline_kernel(%arg0: i32, %arg1: memref<18xf32, #tpu.memory_space<smem>>, %arg2: memref<18xf32, #tpu.memory_space<smem>>, %arg3: memref<6xf32, #tpu.memory_space<smem>>, %arg4: memref<8x128xf32, #tpu.memory_space<vmem>>, %arg5: memref<8x128xf32, #tpu.memory_space<vmem>>) attributes {dimension_semantics = [#tpu.dimension_semantics<parallel>], iteration_bounds = array<i64: 2>, scalar_prefetch = 0 : i64, scratch_operands = 0 : i64, tpu.core_type = #tpu.core_type<tc>, window_params = [{transform_indices = @transform_0, window_bounds = array<i64: 18>}, {transform_indices = @transform_1, window_bounds = array<i64: 18>}, {transform_indices = @transform_2, window_bounds = array<i64: 6>}, {transform_indices = @transform_3, window_bounds = array<i64: 8, 128>}, {transform_indices = @transform_4, window_bounds = array<i64: 8, 128>}]} {
    %c0 = arith.constant 0 : index
    %c0_0 = arith.constant 0 : index
    %0 = vector.load %arg4[%c0, %c0_0] : memref<8x128xf32, #tpu.memory_space<vmem>>, vector<8x128xf32>
    %c0_1 = arith.constant 0 : index
    %1 = memref.load %arg1[%c0_1] : memref<18xf32, #tpu.memory_space<smem>>
    %2 = vector.broadcast %1 : f32 to vector<8x128xf32>
    %3 = arith.mulf %0, %2 : vector<8x128xf32>
    %c0_2 = arith.constant 0 : index
    %4 = memref.load %arg2[%c0_2] : memref<18xf32, #tpu.memory_space<smem>>
    %5 = vector.broadcast %4 : f32 to vector<8x128xf32>
    %6 = arith.addf %3, %5 : vector<8x128xf32>
    %cst = arith.constant 0.000000e+00 : f32
    %cst_3 = arith.constant 1.000000e+00 : f32
    %7 = vector.broadcast %cst : f32 to vector<8x128xf32>
    %8 = arith.maximumf %7, %6 : vector<8x128xf32>
    %9 = vector.broadcast %cst_3 : f32 to vector<8x128xf32>
    %10 = arith.minimumf %9, %8 : vector<8x128xf32>
    %c1 = arith.constant 1 : index
    %11 = memref.load %arg1[%c1] : memref<18xf32, #tpu.memory_space<smem>>
    %12 = vector.broadcast %11 : f32 to vector<8x128xf32>
    %13 = arith.mulf %0, %12 : vector<8x128xf32>
    %c1_4 = arith.constant 1 : index
    %14 = memref.load %arg2[%c1_4] : memref<18xf32, #tpu.memory_space<smem>>
    %15 = vector.broadcast %14 : f32 to vector<8x128xf32>
    %16 = arith.addf %13, %15 : vector<8x128xf32>
    %cst_5 = arith.constant 0.000000e+00 : f32
    %cst_6 = arith.constant 1.000000e+00 : f32
    %17 = vector.broadcast %cst_5 : f32 to vector<8x128xf32>
    %18 = arith.maximumf %17, %16 : vector<8x128xf32>
    %19 = vector.broadcast %cst_6 : f32 to vector<8x128xf32>
    %20 = arith.minimumf %19, %18 : vector<8x128xf32>
    %21 = arith.mulf %10, %20 : vector<8x128xf32>
    %c2 = arith.constant 2 : index
    %22 = memref.load %arg1[%c2] : memref<18xf32, #tpu.memory_space<smem>>
    %23 = vector.broadcast %22 : f32 to vector<8x128xf32>
    %24 = arith.mulf %0, %23 : vector<8x128xf32>
    %c2_7 = arith.constant 2 : index
    %25 = memref.load %arg2[%c2_7] : memref<18xf32, #tpu.memory_space<smem>>
    %26 = vector.broadcast %25 : f32 to vector<8x128xf32>
    %27 = arith.addf %24, %26 : vector<8x128xf32>
    %cst_8 = arith.constant 0.000000e+00 : f32
    %cst_9 = arith.constant 1.000000e+00 : f32
    %28 = vector.broadcast %cst_8 : f32 to vector<8x128xf32>
    %29 = arith.maximumf %28, %27 : vector<8x128xf32>
    %30 = vector.broadcast %cst_9 : f32 to vector<8x128xf32>
    %31 = arith.minimumf %30, %29 : vector<8x128xf32>
    %32 = arith.mulf %21, %31 : vector<8x128xf32>
    %c0_10 = arith.constant 0 : index
    %33 = memref.load %arg3[%c0_10] : memref<6xf32, #tpu.memory_space<smem>>
    %34 = vector.broadcast %33 : f32 to vector<8x128xf32>
    %35 = arith.mulf %32, %34 : vector<8x128xf32>
    %c3 = arith.constant 3 : index
    %36 = memref.load %arg1[%c3] : memref<18xf32, #tpu.memory_space<smem>>
    %37 = vector.broadcast %36 : f32 to vector<8x128xf32>
    %38 = arith.mulf %0, %37 : vector<8x128xf32>
    %c3_11 = arith.constant 3 : index
    %39 = memref.load %arg2[%c3_11] : memref<18xf32, #tpu.memory_space<smem>>
    %40 = vector.broadcast %39 : f32 to vector<8x128xf32>
    %41 = arith.addf %38, %40 : vector<8x128xf32>
    %cst_12 = arith.constant 0.000000e+00 : f32
    %cst_13 = arith.constant 1.000000e+00 : f32
    %42 = vector.broadcast %cst_12 : f32 to vector<8x128xf32>
    %43 = arith.maximumf %42, %41 : vector<8x128xf32>
    %44 = vector.broadcast %cst_13 : f32 to vector<8x128xf32>
    %45 = arith.minimumf %44, %43 : vector<8x128xf32>
    %c4 = arith.constant 4 : index
    %46 = memref.load %arg1[%c4] : memref<18xf32, #tpu.memory_space<smem>>
    %47 = vector.broadcast %46 : f32 to vector<8x128xf32>
    %48 = arith.mulf %0, %47 : vector<8x128xf32>
    %c4_14 = arith.constant 4 : index
    %49 = memref.load %arg2[%c4_14] : memref<18xf32, #tpu.memory_space<smem>>
    %50 = vector.broadcast %49 : f32 to vector<8x128xf32>
    %51 = arith.addf %48, %50 : vector<8x128xf32>
    %cst_15 = arith.constant 0.000000e+00 : f32
    %cst_16 = arith.constant 1.000000e+00 : f32
    %52 = vector.broadcast %cst_15 : f32 to vector<8x128xf32>
    %53 = arith.maximumf %52, %51 : vector<8x128xf32>
    %54 = vector.broadcast %cst_16 : f32 to vector<8x128xf32>
    %55 = arith.minimumf %54, %53 : vector<8x128xf32>
    %56 = arith.mulf %45, %55 : vector<8x128xf32>
    %c5 = arith.constant 5 : index
    %57 = memref.load %arg1[%c5] : memref<18xf32, #tpu.memory_space<smem>>
    %58 = vector.broadcast %57 : f32 to vector<8x128xf32>
    %59 = arith.mulf %0, %58 : vector<8x128xf32>
    %c5_17 = arith.constant 5 : index
    %60 = memref.load %arg2[%c5_17] : memref<18xf32, #tpu.memory_space<smem>>
    %61 = vector.broadcast %60 : f32 to vector<8x128xf32>
    %62 = arith.addf %59, %61 : vector<8x128xf32>
    %cst_18 = arith.constant 0.000000e+00 : f32
    %cst_19 = arith.constant 1.000000e+00 : f32
    %63 = vector.broadcast %cst_18 : f32 to vector<8x128xf32>
    %64 = arith.maximumf %63, %62 : vector<8x128xf32>
    %65 = vector.broadcast %cst_19 : f32 to vector<8x128xf32>
    %66 = arith.minimumf %65, %64 : vector<8x128xf32>
    %67 = arith.mulf %56, %66 : vector<8x128xf32>
    %c1_20 = arith.constant 1 : index
    %68 = memref.load %arg3[%c1_20] : memref<6xf32, #tpu.memory_space<smem>>
    %69 = vector.broadcast %68 : f32 to vector<8x128xf32>
    %70 = arith.mulf %67, %69 : vector<8x128xf32>
    %71 = arith.addf %35, %70 : vector<8x128xf32>
    %c6 = arith.constant 6 : index
    %72 = memref.load %arg1[%c6] : memref<18xf32, #tpu.memory_space<smem>>
    %73 = vector.broadcast %72 : f32 to vector<8x128xf32>
    %74 = arith.mulf %0, %73 : vector<8x128xf32>
    %c6_21 = arith.constant 6 : index
    %75 = memref.load %arg2[%c6_21] : memref<18xf32, #tpu.memory_space<smem>>
    %76 = vector.broadcast %75 : f32 to vector<8x128xf32>
    %77 = arith.addf %74, %76 : vector<8x128xf32>
    %cst_22 = arith.constant 0.000000e+00 : f32
    %cst_23 = arith.constant 1.000000e+00 : f32
    %78 = vector.broadcast %cst_22 : f32 to vector<8x128xf32>
    %79 = arith.maximumf %78, %77 : vector<8x128xf32>
    %80 = vector.broadcast %cst_23 : f32 to vector<8x128xf32>
    %81 = arith.minimumf %80, %79 : vector<8x128xf32>
    %c7 = arith.constant 7 : index
    %82 = memref.load %arg1[%c7] : memref<18xf32, #tpu.memory_space<smem>>
    %83 = vector.broadcast %82 : f32 to vector<8x128xf32>
    %84 = arith.mulf %0, %83 : vector<8x128xf32>
    %c7_24 = arith.constant 7 : index
    %85 = memref.load %arg2[%c7_24] : memref<18xf32, #tpu.memory_space<smem>>
    %86 = vector.broadcast %85 : f32 to vector<8x128xf32>
    %87 = arith.addf %84, %86 : vector<8x128xf32>
    %cst_25 = arith.constant 0.000000e+00 : f32
    %cst_26 = arith.constant 1.000000e+00 : f32
    %88 = vector.broadcast %cst_25 : f32 to vector<8x128xf32>
    %89 = arith.maximumf %88, %87 : vector<8x128xf32>
    %90 = vector.broadcast %cst_26 : f32 to vector<8x128xf32>
    %91 = arith.minimumf %90, %89 : vector<8x128xf32>
    %92 = arith.mulf %81, %91 : vector<8x128xf32>
    %c8 = arith.constant 8 : index
    %93 = memref.load %arg1[%c8] : memref<18xf32, #tpu.memory_space<smem>>
    %94 = vector.broadcast %93 : f32 to vector<8x128xf32>
    %95 = arith.mulf %0, %94 : vector<8x128xf32>
    %c8_27 = arith.constant 8 : index
    %96 = memref.load %arg2[%c8_27] : memref<18xf32, #tpu.memory_space<smem>>
    %97 = vector.broadcast %96 : f32 to vector<8x128xf32>
    %98 = arith.addf %95, %97 : vector<8x128xf32>
    %cst_28 = arith.constant 0.000000e+00 : f32
    %cst_29 = arith.constant 1.000000e+00 : f32
    %99 = vector.broadcast %cst_28 : f32 to vector<8x128xf32>
    %100 = arith.maximumf %99, %98 : vector<8x128xf32>
    %101 = vector.broadcast %cst_29 : f32 to vector<8x128xf32>
    %102 = arith.minimumf %101, %100 : vector<8x128xf32>
    %103 = arith.mulf %92, %102 : vector<8x128xf32>
    %c2_30 = arith.constant 2 : index
    %104 = memref.load %arg3[%c2_30] : memref<6xf32, #tpu.memory_space<smem>>
    %105 = vector.broadcast %104 : f32 to vector<8x128xf32>
    %106 = arith.mulf %103, %105 : vector<8x128xf32>
    %107 = arith.addf %71, %106 : vector<8x128xf32>
    %c9 = arith.constant 9 : index
    %108 = memref.load %arg1[%c9] : memref<18xf32, #tpu.memory_space<smem>>
    %109 = vector.broadcast %108 : f32 to vector<8x128xf32>
    %110 = arith.mulf %0, %109 : vector<8x128xf32>
    %c9_31 = arith.constant 9 : index
    %111 = memref.load %arg2[%c9_31] : memref<18xf32, #tpu.memory_space<smem>>
    %112 = vector.broadcast %111 : f32 to vector<8x128xf32>
    %113 = arith.addf %110, %112 : vector<8x128xf32>
    %cst_32 = arith.constant 0.000000e+00 : f32
    %cst_33 = arith.constant 1.000000e+00 : f32
    %114 = vector.broadcast %cst_32 : f32 to vector<8x128xf32>
    %115 = arith.maximumf %114, %113 : vector<8x128xf32>
    %116 = vector.broadcast %cst_33 : f32 to vector<8x128xf32>
    %117 = arith.minimumf %116, %115 : vector<8x128xf32>
    %c10 = arith.constant 10 : index
    %118 = memref.load %arg1[%c10] : memref<18xf32, #tpu.memory_space<smem>>
    %119 = vector.broadcast %118 : f32 to vector<8x128xf32>
    %120 = arith.mulf %0, %119 : vector<8x128xf32>
    %c10_34 = arith.constant 10 : index
    %121 = memref.load %arg2[%c10_34] : memref<18xf32, #tpu.memory_space<smem>>
    %122 = vector.broadcast %121 : f32 to vector<8x128xf32>
    %123 = arith.addf %120, %122 : vector<8x128xf32>
    %cst_35 = arith.constant 0.000000e+00 : f32
    %cst_36 = arith.constant 1.000000e+00 : f32
    %124 = vector.broadcast %cst_35 : f32 to vector<8x128xf32>
    %125 = arith.maximumf %124, %123 : vector<8x128xf32>
    %126 = vector.broadcast %cst_36 : f32 to vector<8x128xf32>
    %127 = arith.minimumf %126, %125 : vector<8x128xf32>
    %128 = arith.mulf %117, %127 : vector<8x128xf32>
    %c11 = arith.constant 11 : index
    %129 = memref.load %arg1[%c11] : memref<18xf32, #tpu.memory_space<smem>>
    %130 = vector.broadcast %129 : f32 to vector<8x128xf32>
    %131 = arith.mulf %0, %130 : vector<8x128xf32>
    %c11_37 = arith.constant 11 : index
    %132 = memref.load %arg2[%c11_37] : memref<18xf32, #tpu.memory_space<smem>>
    %133 = vector.broadcast %132 : f32 to vector<8x128xf32>
    %134 = arith.addf %131, %133 : vector<8x128xf32>
    %cst_38 = arith.constant 0.000000e+00 : f32
    %cst_39 = arith.constant 1.000000e+00 : f32
    %135 = vector.broadcast %cst_38 : f32 to vector<8x128xf32>
    %136 = arith.maximumf %135, %134 : vector<8x128xf32>
    %137 = vector.broadcast %cst_39 : f32 to vector<8x128xf32>
    %138 = arith.minimumf %137, %136 : vector<8x128xf32>
    %139 = arith.mulf %128, %138 : vector<8x128xf32>
    %c3_40 = arith.constant 3 : index
    %140 = memref.load %arg3[%c3_40] : memref<6xf32, #tpu.memory_space<smem>>
    %141 = vector.broadcast %140 : f32 to vector<8x128xf32>
    %142 = arith.mulf %139, %141 : vector<8x128xf32>
    %143 = arith.addf %107, %142 : vector<8x128xf32>
    %c12 = arith.constant 12 : index
    %144 = memref.load %arg1[%c12] : memref<18xf32, #tpu.memory_space<smem>>
    %145 = vector.broadcast %144 : f32 to vector<8x128xf32>
    %146 = arith.mulf %0, %145 : vector<8x128xf32>
    %c12_41 = arith.constant 12 : index
    %147 = memref.load %arg2[%c12_41] : memref<18xf32, #tpu.memory_space<smem>>
    %148 = vector.broadcast %147 : f32 to vector<8x128xf32>
    %149 = arith.addf %146, %148 : vector<8x128xf32>
    %cst_42 = arith.constant 0.000000e+00 : f32
    %cst_43 = arith.constant 1.000000e+00 : f32
    %150 = vector.broadcast %cst_42 : f32 to vector<8x128xf32>
    %151 = arith.maximumf %150, %149 : vector<8x128xf32>
    %152 = vector.broadcast %cst_43 : f32 to vector<8x128xf32>
    %153 = arith.minimumf %152, %151 : vector<8x128xf32>
    %c13 = arith.constant 13 : index
    %154 = memref.load %arg1[%c13] : memref<18xf32, #tpu.memory_space<smem>>
    %155 = vector.broadcast %154 : f32 to vector<8x128xf32>
    %156 = arith.mulf %0, %155 : vector<8x128xf32>
    %c13_44 = arith.constant 13 : index
    %157 = memref.load %arg2[%c13_44] : memref<18xf32, #tpu.memory_space<smem>>
    %158 = vector.broadcast %157 : f32 to vector<8x128xf32>
    %159 = arith.addf %156, %158 : vector<8x128xf32>
    %cst_45 = arith.constant 0.000000e+00 : f32
    %cst_46 = arith.constant 1.000000e+00 : f32
    %160 = vector.broadcast %cst_45 : f32 to vector<8x128xf32>
    %161 = arith.maximumf %160, %159 : vector<8x128xf32>
    %162 = vector.broadcast %cst_46 : f32 to vector<8x128xf32>
    %163 = arith.minimumf %162, %161 : vector<8x128xf32>
    %164 = arith.mulf %153, %163 : vector<8x128xf32>
    %c14 = arith.constant 14 : index
    %165 = memref.load %arg1[%c14] : memref<18xf32, #tpu.memory_space<smem>>
    %166 = vector.broadcast %165 : f32 to vector<8x128xf32>
    %167 = arith.mulf %0, %166 : vector<8x128xf32>
    %c14_47 = arith.constant 14 : index
    %168 = memref.load %arg2[%c14_47] : memref<18xf32, #tpu.memory_space<smem>>
    %169 = vector.broadcast %168 : f32 to vector<8x128xf32>
    %170 = arith.addf %167, %169 : vector<8x128xf32>
    %cst_48 = arith.constant 0.000000e+00 : f32
    %cst_49 = arith.constant 1.000000e+00 : f32
    %171 = vector.broadcast %cst_48 : f32 to vector<8x128xf32>
    %172 = arith.maximumf %171, %170 : vector<8x128xf32>
    %173 = vector.broadcast %cst_49 : f32 to vector<8x128xf32>
    %174 = arith.minimumf %173, %172 : vector<8x128xf32>
    %175 = arith.mulf %164, %174 : vector<8x128xf32>
    %c4_50 = arith.constant 4 : index
    %176 = memref.load %arg3[%c4_50] : memref<6xf32, #tpu.memory_space<smem>>
    %177 = vector.broadcast %176 : f32 to vector<8x128xf32>
    %178 = arith.mulf %175, %177 : vector<8x128xf32>
    %179 = arith.addf %143, %178 : vector<8x128xf32>
    %c15 = arith.constant 15 : index
    %180 = memref.load %arg1[%c15] : memref<18xf32, #tpu.memory_space<smem>>
    %181 = vector.broadcast %180 : f32 to vector<8x128xf32>
    %182 = arith.mulf %0, %181 : vector<8x128xf32>
    %c15_51 = arith.constant 15 : index
    %183 = memref.load %arg2[%c15_51] : memref<18xf32, #tpu.memory_space<smem>>
    %184 = vector.broadcast %183 : f32 to vector<8x128xf32>
    %185 = arith.addf %182, %184 : vector<8x128xf32>
    %cst_52 = arith.constant 0.000000e+00 : f32
    %cst_53 = arith.constant 1.000000e+00 : f32
    %186 = vector.broadcast %cst_52 : f32 to vector<8x128xf32>
    %187 = arith.maximumf %186, %185 : vector<8x128xf32>
    %188 = vector.broadcast %cst_53 : f32 to vector<8x128xf32>
    %189 = arith.minimumf %188, %187 : vector<8x128xf32>
    %c16 = arith.constant 16 : index
    %190 = memref.load %arg1[%c16] : memref<18xf32, #tpu.memory_space<smem>>
    %191 = vector.broadcast %190 : f32 to vector<8x128xf32>
    %192 = arith.mulf %0, %191 : vector<8x128xf32>
    %c16_54 = arith.constant 16 : index
    %193 = memref.load %arg2[%c16_54] : memref<18xf32, #tpu.memory_space<smem>>
    %194 = vector.broadcast %193 : f32 to vector<8x128xf32>
    %195 = arith.addf %192, %194 : vector<8x128xf32>
    %cst_55 = arith.constant 0.000000e+00 : f32
    %cst_56 = arith.constant 1.000000e+00 : f32
    %196 = vector.broadcast %cst_55 : f32 to vector<8x128xf32>
    %197 = arith.maximumf %196, %195 : vector<8x128xf32>
    %198 = vector.broadcast %cst_56 : f32 to vector<8x128xf32>
    %199 = arith.minimumf %198, %197 : vector<8x128xf32>
    %200 = arith.mulf %189, %199 : vector<8x128xf32>
    %c17 = arith.constant 17 : index
    %201 = memref.load %arg1[%c17] : memref<18xf32, #tpu.memory_space<smem>>
    %202 = vector.broadcast %201 : f32 to vector<8x128xf32>
    %203 = arith.mulf %0, %202 : vector<8x128xf32>
    %c17_57 = arith.constant 17 : index
    %204 = memref.load %arg2[%c17_57] : memref<18xf32, #tpu.memory_space<smem>>
    %205 = vector.broadcast %204 : f32 to vector<8x128xf32>
    %206 = arith.addf %203, %205 : vector<8x128xf32>
    %cst_58 = arith.constant 0.000000e+00 : f32
    %cst_59 = arith.constant 1.000000e+00 : f32
    %207 = vector.broadcast %cst_58 : f32 to vector<8x128xf32>
    %208 = arith.maximumf %207, %206 : vector<8x128xf32>
    %209 = vector.broadcast %cst_59 : f32 to vector<8x128xf32>
    %210 = arith.minimumf %209, %208 : vector<8x128xf32>
    %211 = arith.mulf %200, %210 : vector<8x128xf32>
    %c5_60 = arith.constant 5 : index
    %212 = memref.load %arg3[%c5_60] : memref<6xf32, #tpu.memory_space<smem>>
    %213 = vector.broadcast %212 : f32 to vector<8x128xf32>
    %214 = arith.mulf %211, %213 : vector<8x128xf32>
    %215 = arith.addf %179, %214 : vector<8x128xf32>
    %c0_61 = arith.constant 0 : index
    %c0_62 = arith.constant 0 : index
    %216 = vector.load %arg5[%c0_61, %c0_62] : memref<8x128xf32, #tpu.memory_space<vmem>>, vector<8x128xf32>
    tpu.vector_store %arg5[%c0_61, %c0_62], %215 {strides = array<i32>} : memref<8x128xf32, #tpu.memory_space<vmem>>, vector<8x128xf32>,
    return
  }
  func.func @transform_0(%arg0: i32) -> i32 {
    %c0_i32 = arith.constant 0 : i32
    %c0_i32_0 = arith.constant 0 : i32
    return %c0_i32 : i32
  }
  func.func @transform_1(%arg0: i32) -> i32 {
    %c0_i32 = arith.constant 0 : i32
    %c0_i32_0 = arith.constant 0 : i32
    return %c0_i32 : i32
  }
  func.func @transform_2(%arg0: i32) -> i32 {
    %c0_i32 = arith.constant 0 : i32
    %c0_i32_0 = arith.constant 0 : i32
    return %c0_i32 : i32
  }
  func.func @transform_3(%arg0: i32) -> (i32, i32) {
    %c0_i32 = arith.constant 0 : i32
    %c0_i32_0 = arith.constant 0 : i32
    return %arg0, %c0_i32 : i32, i32
  }
  func.func @transform_4(%arg0: i32) -> (i32, i32) {
    %c0_i32 = arith.constant 0 : i32
    %c0_i32_0 = arith.constant 0 : i32
    return %arg0, %c0_i32 : i32, i32
  }
}

</mosaic_0001>

<bundles_post_ra>
// kernel: tpu_custom_call.1
= control target key start
LH: loop header
LB: loop body
LE: loop exit
PB: predicated region body
PF: predicated region fallthrough
CT: control target
= control target key end

     0   :  { %9 = vsyncpa [#allocation5], 0  ;;  %s1213_s0 = inlined_call_operand.hbm [shape: f32[18], index: 0, kind: input, shape index: {}]   ;;  %s1214_s1 = inlined_call_operand.vmem [shape: f32[18], index: 1, kind: input, shape index: {}]   ;;  %s1215_s2 = inlined_call_operand.vmem [shape: f32[6], index: 2, kind: input, shape index: {}]   ;;  %s1216_s3 = inlined_call_operand.hbm [shape: f32[16,128], index: 3, kind: input, shape index: {}]   ;;  %s1217_s4 = inlined_call_operand.hbm [shape: f32[16,128], index: 4, kind: output, shape index: {}]  }
   0x1   :  { %10 = vsyncpa [#allocation6], 0 }
   0x2   :  { %11 = vsyncpa [#allocation9], 0 }
   0x3   :  { %12 = vsyncpa [#allocation3], 0 }
   0x4   :  { %14 = vsyncpa [#allocation3 + $0x1], 0 }
   0x5   :  { %15 = vsyncpa [#allocation4], 0 }
   0x6   :  { %17 = vsyncpa [#allocation4 + $0x1], 0  ;;  %s867_s15 = smov 0   ;;  %s869_s16 = smov 0  }
   0x7   :  { %s871_s17 = smov 0   ;;  %s873_s18 = smov 0  }
   0x8 LB: > { %s888_s19 = sadd.s32 4294967295, %s835_s18   ;;  %s550_s20 = sadd.s32 4294967294, %s835_s18   ;;  %s835_s18 = sphi %s873_s18, %s1241_s18   ;;  %s831_s17 = sphi %s871_s17, %s1240_s17   ;;  %s827_s16 = sphi %s869_s16, %s1239_s16   ;;  %s823_s15 = sphi %s867_s15, %s1238_s15  }
   0x9   : > { %p106_p0 = scmp.ne.s32.totalorder %s827_s16, %s823_s15  ;;  %p1218_p1 = scmp.eq.s32.totalorder %s888_s19, 0 }
   0xa   : > { %p136_p3 = scmp.eq.s32.totalorder %s550_s20, 1  ;;  %p551_p5 = scmp.ge.s32.totalorder %s835_s18, 1 }
   0xb   : > { %p897_p4 = por %p1218_p1, %p106_p0  ;;  %p143_p7 = scmp.lt.s32.totalorder %s835_s18, 3 }
   0xc   : > { %p902_p6 = por %p136_p3, %p106_p0  ;;  %s165_s26 = sshll.u32 %s1214_s1, 4  ;;  %s166_s26 = int_to_ptr.vmem [resolvable:$true] %s165_s26 }
   0xd   : > { %s1221_s21 = scalar_select %p897_p4, 1, 0 }
   0xe   : > { %s1222_s22 = scalar_select %p902_p6, 1, 0 }
   0xf   : > { %p907_p8 = pnand %p551_p5, %p143_p7  ;;  %s176_s29 = sshll.u32 %s1215_s2, 4  ;;  %s926_s29 = int_to_ptr.vmem [resolvable:$true] %s176_s29 }
  0x10   : > { %s929_s5 = sadd.s32 1, %s835_s18   ;;  %s684_s8 = scalar_lea.hbm %s1213_s0, 16 }
  0x11   : > { %p623_p10 = pneg %p907_p8  ;;  %p685_p12 = scmp.ne.s32.totalorder %s1213_s0, %s684_s8 }
  0x12   : > { %p691_p5 = scmp.lt.u32.totalorder %s684_s8, %s1213_s0 }
  0x13   : > { %p922_p11 = pnand %p623_p10, %p1218_p1 }
  0x15   : > { %p686_p13 = pneg %p922_p11 }
  0x17   : > { %p687_p0 = pnand %p686_p13, %p685_p12 }
  0x19   : > { %p688_p3 = pneg %p687_p0 }
  0x1b   : > { %p693_p7 = pnand %p691_p5, %p688_p3 }
  0x1d   : > { %696 = shalt.err (!%p693_p7)
}
  0x1e   : > { %s837_s13 = smov [#allocation2]   ;;  %s697_s24 = scalar_lea.vmem %s166_s26, 16 }
  0x1f   : > { %626 = dma.hbm_to_smem (!%p922_p11), %s1213_s0, 16, %s837_s13, [#allocation5]  }
  0x20   : > { %p698_p10 = scmp.ne.s32.totalorder %s166_s26, %s697_s24  ;;  %p705_p9 = scmp.lt.s32.totalorder %s166_s26, %s166_s26 }
  0x21   : > { %p706_p1 = scmp.lt.s32.totalorder %s697_s24, %s697_s24 }
  0x22   : > { %p700_p12 = pnand %p698_p10, %p686_p13 }
  0x23   : > { %p707_p2 = por %p706_p1, %p705_p9 }
  0x24   : > { %p701_p0 = pneg %p700_p12 }
  0x26   : > { %p708_p6 = pnand %p707_p2, %p701_p0 }
  0x28   : > { %711 = shalt.err (!%p708_p6)
}
  0x29   : > { %s838_s25 = smov [#allocation7]   ;;  %s712_s27 = scalar_lea.vmem %s926_s29, 16 }
  0x2a   : > { %629 = dma.vmem_to_smem (!%p922_p11), %s166_s26, 16, %s838_s25, [#allocation6]  }
  0x2b   : > { %p713_p3 = scmp.ne.s32.totalorder %s926_s29, %s712_s27  ;;  %p720_p10 = scmp.lt.s32.totalorder %s926_s29, %s926_s29 }
  0x2c   : > { %p721_p12 = scmp.lt.s32.totalorder %s712_s27, %s712_s27 }
  0x2d   : > { %p715_p5 = pnand %p713_p3, %p686_p13 }
  0x2e   : > { %p722_p1 = por %p721_p12, %p720_p10 }
  0x2f   : > { %p716_p7 = pneg %p715_p5 }
  0x31   : > { %p723_p2 = pnand %p722_p1, %p716_p7 }
  0x33   : > { %726 = shalt.err (!%p723_p2)
}
  0x34   : > { %s839_s28 = smov [#allocation8]   ;;  %s90_s26 = ssub.s32 %s835_s18, %s929_s5 }
  0x35   : > { %632 = dma.vmem_to_smem (!%p922_p11), %s926_s29, 16, %s839_s28, [#allocation9]  }
  0x36   : > { %s93_s6 = sadd.s32 1, %s831_s17  ;;  %p91_p6 = scmp.eq.s32.totalorder %s90_s26, 0 }
  0x37   : > { %p100_p9 = scmp.ne.s32.totalorder %s831_s17, %s827_s16  ;;  %p101_p13 = scmp.eq.s32.totalorder %s835_s18, 0 }
  0x38   : > { %p644_p0 = scmp.lt.s32.totalorder %s835_s18, 2  ;;  %p1225_p5 = scmp.eq.s32.totalorder %s888_s19, 1 }
  0x39   : > { %s973_s30 = scalar_select %p91_p6, %s831_s17, %s93_s6  }
  0x3a   : > { %p102_p3 = por %p101_p13, %p100_p9  ;;  %p977_p7 = por %p1225_p5, %p100_p9 }
  0x3b   : > { %s187_s8 = sand.u32 1, %s831_s17   ;;  %s557_s9 = sshll.u32 %s835_s18, 7 }
  0x3c   : > { %s1226_s7 = scalar_select %p977_p7, 1, 0 }
  0x3d   : > { %s556_s10 = sshll.u32 %s187_s8, 3  ;;  %s986_s29 = scalar_lea.hbm %s1216_s3, %s557_s9 }
  0x3e   : > { %s191_s13 = scalar_lea.vmem [#allocation10], %s556_s10  ;;  %p988_p11 = pnand %p644_p0, %p102_p3 }
  0x3f   : > { %s198_s14 = sshll.u32 %s191_s13, 4  ;;  %s188_s24 = scalar_lea.sflag [#allocation3], %s187_s8  ;;  %s992_s14 = int_to_ptr.vmem [resolvable:$true] %s198_s14 }
  0x40   : > { %s727_s25 = scalar_lea.hbm %s986_s29, 128  ;;  %p729_p12 = pneg %p988_p11 }
  0x41   : > { %p728_p10 = scmp.ne.s32.totalorder %s986_s29, %s727_s25  ;;  %s732_s26 = scalar_lea.hbm %s1216_s3, 256 }
  0x42   : > { %p733_p6 = scmp.lt.u32.totalorder %s986_s29, %s1216_s3  ;;  %p734_p9 = scmp.lt.u32.totalorder %s732_s26, %s727_s25 }
  0x43   : > { %p730_p1 = pnand %p729_p12, %p728_p10  ;;  %p736_p0 = scmp.lt.u32.totalorder %s727_s25, %s986_s29 }
  0x44   : > { %p735_p13 = por %p734_p9, %p733_p6 }
  0x45   : > { %p731_p2 = pneg %p730_p1 }
  0x46   : > { %p737_p3 = por %p736_p0, %p735_p13 }
  0x48   : > { %p738_p5 = pnand %p737_p3, %p731_p2 }
  0x4a   : > { %741 = shalt.err (!%p738_p5)
}
  0x4b   : > { %s742_s8 = scalar_lea.vmem %s992_s14, 128  ;;  %s840_s10 = smov [#allocation10]  }
  0x4c   : > { %p743_p10 = scmp.ne.s32.totalorder %s992_s14, %s742_s8  ;;  %s747_s11 = sshll.u32 %s840_s10, 4  ;;  %s748_s11 = int_to_ptr.vmem [resolvable:$false] %s747_s11 }
  0x4d   : > { %s749_s12 = scalar_lea.vmem %s748_s11, 256  ;;  %p750_p4 = scmp.lt.s32.totalorder %s992_s14, %s748_s11 }
  0x4e   : > { %p745_p1 = pnand %p743_p10, %p729_p12  ;;  %p751_p6 = scmp.lt.s32.totalorder %s749_s12, %s742_s8 }
  0x50   : > { %p746_p7 = pneg %p745_p1  ;;  %p752_p9 = por %p751_p6, %p750_p4 }
  0x52   : > { %p753_p13 = pnand %p752_p9, %p746_p7 }
  0x54   : > { %756 = shalt.err (!%p753_p13)
}
  0x55   : > { %636 = dma.hbm_to_vmem [thread:$0]  (!%p988_p11), %s986_s29, 128, %s992_s14, %s188_s24  }
  0x56   : > { %207 = sbr.rel (%p907_p8) target bundleno = 172 (0xac), region = 36  ;;  %p1228_p12 = scmp.eq.s32.totalorder (!%p907_p8), %s888_s19, 0 }
  0x5d   : > { %802 = dma.done.wait (%p1228_p12), [#allocation5], 16   ;;  %p1229_p2 = pmov %p1228_p12 }
  0x5f   : > { %804 = vsyncadd (%p1229_p2), [#allocation5], 4294967280  ;;  %p1230_p0 = pmov %p1229_p2 }
  0x61   : > { %806 = dma.done.wait (%p1230_p0), [#allocation6], 16   ;;  %p1231_p4 = pmov %p1230_p0 }
  0x62   : > { %p1232_p7 = pmov %p1230_p0 }
  0x63   : > { %808 = vsyncadd (%p1231_p4), [#allocation6], 4294967280 }
  0x64   : > { %810 = dma.done.wait (%p1232_p7), [#allocation9], 16   ;;  %p1233_p11 = pmov %p1230_p0 }
  0x65   : > { %s1034_s23 = sand.u32 1, %s827_s16   ;;  %p1234_p8 = scmp.ne.s32.totalorder %s1221_s21, 0 }
  0x66   : > { %812 = vsyncadd (%p1233_p11), [#allocation9], 4294967280  ;;  %s562_s29 = sshll.u32 %s1034_s23, 3  ;;  %s222_s13 = scalar_lea.sflag [#allocation3], %s1034_s23 }
  0x67   : > { %s225_s14 = scalar_lea.vmem [#allocation10], %s562_s29 }
  0x68   : > { %814 = dma.done.wait (%p1234_p8), %s222_s13, 128  }
  0x69   : > { %816 = vsyncadd (%p1234_p8), %s222_s13, 4294967168 }
  0x6a   : > { %230 = sfence }
  0x6b   : > { %s252_s20 = sld [smem:[#allocation2]]  ;;  %s564_s25 = sld [smem:[#allocation2 + $0x1]]  ;;  %v1044_v0 = vld [vmem:[%s225_s14] sm:$0xff] }
  0x6c   : > { %s255_s24 = sld [smem:[#allocation7]]  ;;  %s565_s27 = sld [smem:[#allocation7 + $0x1]] }
  0x6d   : > { %s566_s28 = sld [smem:[#allocation2 + $0x2]]  ;;  %s568_s6 = sld [smem:[#allocation2 + $0x3]] }
  0x6e   : > { %s567_s26 = sld [smem:[#allocation7 + $0x2]]  ;;  %s1046_s9 = sld [smem:[#allocation7 + $0x3]] }
  0x6f   : > { %s570_s8 = sld [smem:[#allocation2 + $0x4]]  ;;  %s1050_s11 = sld [smem:[#allocation2 + $0x5]] }
  0x70   : > { %s1048_s10 = sld [smem:[#allocation7 + $0x4]]  ;;  %s1052_s21 = sld [smem:[#allocation7 + $0x5]] }
  0x71   : > { %v253_v1 = vstv %s252_s20  ;;  %v261_v4 = vstv %s564_s25  ;;  %s1055_s12 = sld [smem:[#allocation2 + $0x6]]  ;;  %s1061_s14 = sld [smem:[#allocation2 + $0x7]] }
  0x72   : > { %v254_v2 = vmul.f32 %v253_v1, %v1044_v0  ;;  %v256_v3 = vstv %s255_s24  ;;  %v262_v5 = vmul.f32 %v261_v4, %v1044_v0  ;;  %v264_v6 = vstv %s565_s27  ;;  %s1058_s13 = sld [smem:[#allocation7 + $0x6]]  ;;  %s1063_s20 = sld [smem:[#allocation7 + $0x7]] }
  0x73   : > { %v270_v7 = vstv %s566_s28  ;;  %s1065_s24 = sld [smem:[#allocation8]]  ;;  %v282_v12 = vstv %s568_s6  ;;  %s1069_s25 = sld [smem:[#allocation8 + $0x1]] }
  0x74   : > { %v257_v8 = vadd.f32 %v256_v3, %v254_v2  ;;  %v271_v9 = vmul.f32 %v270_v7, %v1044_v0  ;;  %v273_v10 = vstv %s567_s26  ;;  %v265_v11 = vadd.f32 %v264_v6, %v262_v5  ;;  %s1071_s27 = sld [smem:[#allocation2 + $0x8]]  ;;  %s1078_s26 = sld [smem:[#allocation2 + $0x9]] }
  0x75   : > { %v285_v13 = vstv %s1046_s9  ;;  %v283_v16 = vmul.f32 %v282_v12, %v1044_v0  ;;  %v290_v17 = vstv %s570_s8  ;;  %v299_v21 = vstv %s1050_s11  ;;  %s1076_s28 = sld [smem:[#allocation7 + $0x8]]  ;;  %s1081_s6 = sld [smem:[#allocation7 + $0x9]] }
  0x76   : > { %v258_v14 = vmax.f32 %v257_v8, 0.0  ;;  %v274_v15 = vadd.f32 %v273_v10, %v271_v9  ;;  %v266_v18 = vmax.f32 %v265_v11, 0.0  ;;  %v291_v19 = vmul.f32 %v290_v17, %v1044_v0  ;;  %s1083_s9 = sld [smem:[#allocation2 + $0xa]]  ;;  %p1235_p5 = scmp.ne.s32.totalorder %s1226_s7, 0 }
  0x77   : > { %v293_v20 = vstv %s1048_s10  ;;  %v286_v24 = vadd.f32 %v285_v13, %v283_v16  ;;  %v300_v25 = vmul.f32 %v299_v21, %v1044_v0  ;;  %v302_v28 = vstv %s1052_s21  ;;  %s1087_s8 = sld [smem:[#allocation7 + $0xa]]  ;;  %s1089_s10 = sld [smem:[#allocation2 + $0xb]] }
  0x78   : > { %v259_v22 = vmin.f32 %v258_v14, 1.0  ;;  %v275_v23 = vmax.f32 %v274_v15, 0.0  ;;  %v267_v26 = vmin.f32 %v266_v18, 1.0  ;;  %v294_v27 = vadd.f32 %v293_v20, %v291_v19  ;;  %s1093_s11 = sld [smem:[#allocation8 + $0x2]]  ;;  %s1097_s21 = sld [smem:[#allocation7 + $0xb]] }
  0x79   : > { %v287_v30 = vmax.f32 %v286_v24, 0.0  ;;  %v303_v31 = vadd.f32 %v302_v28, %v300_v25  ;;  %v312_v32 = vstv %s1055_s12  ;;  %v315_v36 = vstv %s1058_s13  ;;  %s1103_s12 = sld [smem:[#allocation2 + $0xc]] }
  0x7a   : > { %v276_v29 = vmin.f32 %v275_v23, 1.0  ;;  %v268_v33 = vmul.f32 %v267_v26, %v259_v22  ;;  %v295_v34 = vmax.f32 %v294_v27, 0.0  ;;  %v313_v35 = vmul.f32 %v312_v32, %v1044_v0  ;;  %s1105_s13 = sld [smem:[#allocation7 + $0xc]] }
  0x7b   : > { %v288_v37 = vmin.f32 %v287_v30, 1.0  ;;  %v304_v38 = vmax.f32 %v303_v31, 0.0  ;;  %v320_v39 = vstv %s1061_s14  ;;  %v323_v40 = vstv %s1063_s20  ;;  %s1108_s14 = sld [smem:[#allocation2 + $0xd]] }
  0x7c   : > { %v279_v41 = vstv %s1065_s24  ;;  %v296_v42 = vmin.f32 %v295_v34, 1.0  ;;  %v316_v43 = vadd.f32 %v315_v36, %v313_v35  ;;  %v321_v44 = vmul.f32 %v320_v39, %v1044_v0  ;;  %s1114_s20 = sld [smem:[#allocation7 + $0xd]]  ;;  %s1117_s24 = sld [smem:[#allocation2 + $0xe]] }
  0x7d   : > { %v277_v45 = vmul.f32 %v276_v29, %v268_v33  ;;  %v305_v46 = vmin.f32 %v304_v38, 1.0  ;;  %v308_v47 = vstv %s1069_s25  ;;  %v329_v48 = vstv %s1071_s27  ;;  %s1119_s25 = sld [smem:[#allocation7 + $0xe]]  ;;  %s1126_s27 = sld [smem:[#allocation2 + $0xf]] }
  0x7e   : > { %v297_v49 = vmul.f32 %v296_v42, %v288_v37  ;;  %v317_v50 = vmax.f32 %v316_v43, 0.0  ;;  %v324_v51 = vadd.f32 %v323_v40, %v321_v44  ;;  %v332_v52 = vstv %s1076_s28  ;;  %s1129_s28 = sld [smem:[#allocation7 + $0xf]] }
  0x7f   : > { %v330_v53 = vmul.f32 %v329_v48, %v1044_v0  ;;  %v342_v54 = vstv %s1078_s26  ;;  %v345_v55 = vstv %s1081_s6  ;;  %v350_v56 = vstv %s1083_s9  ;;  %s1131_s26 = sld [smem:[#allocation2 + $0x10]]  ;;  %s1135_s9 = sld [smem:[#allocation8 + $0x3]] }
  0x80   : > { %v306_v57 = vmul.f32 %v305_v46, %v297_v49  ;;  %v318_v58 = vmin.f32 %v317_v50, 1.0  ;;  %v325_v59 = vmax.f32 %v324_v51, 0.0  ;;  %v343_v60 = vmul.f32 %v342_v54, %v1044_v0  ;;  %s1133_s6 = sld [smem:[#allocation7 + $0x10]] }
  0x81   : > { %v333_v61 = vadd.f32 %v332_v52, %v330_v53  ;;  %v351_v62 = vmul.f32 %v350_v56, %v1044_v0  ;;  %v353_v63 = vstv %s1087_s8  ;;  %v359_v1 = vstv %s1089_s10  ;;  %s1141_s8 = sld [smem:[#allocation2 + $0x11]] }
  0x82   : > { %v326_v2 = vmin.f32 %v325_v59, 1.0  ;;  %v338_v3 = vstv %s1093_s11  ;;  %v346_v4 = vadd.f32 %v345_v55, %v343_v60  ;;  %v360_v5 = vmul.f32 %v359_v1, %v1044_v0  ;;  %s1145_s10 = sld [smem:[#allocation7 + $0x11]]  ;;  %s1150_s11 = sld [smem:[#allocation8 + $0x4]] }
  0x83   : > { %v280_v6 = vmul.f32 %v279_v41, %v277_v45  ;;  %v334_v7 = vmax.f32 %v333_v61, 0.0  ;;  %v354_v8 = vadd.f32 %v353_v63, %v351_v62  ;;  %v362_v9 = vstv %s1097_s21  ;;  %s602_s21 = sld [smem:[#allocation8 + $0x5]] }
  0x84   : > { %v309_v10 = vmul.f32 %v308_v47, %v306_v57  ;;  %v327_v11 = vmul.f32 %v326_v2, %v318_v58  ;;  %v347_v12 = vmax.f32 %v346_v4, 0.0  ;;  %v363_v13 = vadd.f32 %v362_v9, %v360_v5 }
  0x85   : > { %v335_v14 = vmin.f32 %v334_v7, 1.0  ;;  %v355_v15 = vmax.f32 %v354_v8, 0.0  ;;  %v372_v16 = vstv %s1103_s12  ;;  %v375_v17 = vstv %s1105_s13  ;;  %s604_s12 = sshll.u32 %s888_s19, 7  ;;  %s250_s13 = scalar_lea.vmem [#allocation11], %s562_s29 }
  0x86   : > { %v348_v18 = vmin.f32 %v347_v12, 1.0  ;;  %v364_v19 = vmax.f32 %v363_v13, 0.0  ;;  %v373_v20 = vmul.f32 %v372_v16, %v1044_v0  ;;  %v380_v21 = vstv %s1108_s14  ;;  %s446_s14 = sshll.u32 %s250_s13, 4  ;;  %s841_s19 = smov [#allocation11]   ;;  %s1171_s14 = int_to_ptr.vmem [resolvable:$true] %s446_s14 }
  0x87   : > { %v336_v22 = vmul.f32 %v335_v14, %v327_v11  ;;  %v356_v23 = vmin.f32 %v355_v15, 1.0  ;;  %v381_v24 = vmul.f32 %v380_v21, %v1044_v0  ;;  %v383_v25 = vstv %s1114_s20  ;;  %s761_s29 = sshll.u32 %s841_s19, 4  ;;  %s762_s29 = int_to_ptr.vmem [resolvable:$false] %s761_s29 }
  0x88   : > { %v365_v26 = vmin.f32 %v364_v19, 1.0  ;;  %v376_v27 = vadd.f32 %v375_v17, %v373_v20  ;;  %v389_v28 = vstv %s1117_s24  ;;  %v392_v29 = vstv %s1119_s25  ;;  %s1169_s25 = scalar_lea.hbm %s1217_s4, %s604_s12  ;;  %p764_p6 = scmp.lt.s32.totalorder %s1171_s14, %s762_s29 }
  0x89   : > { %v357_v30 = vmul.f32 %v356_v23, %v348_v18  ;;  %v384_v31 = vadd.f32 %v383_v25, %v381_v24  ;;  %v390_v32 = vmul.f32 %v389_v28, %v1044_v0  ;;  %v310_v33 = vadd.f32 %v309_v10, %v280_v6 }
  0x8a   : > { %v339_v34 = vmul.f32 %v338_v3, %v336_v22  ;;  %v377_v35 = vmax.f32 %v376_v27, 0.0  ;;  %v402_v36 = vstv %s1126_s27  ;;  %v405_v40 = vstv %s1129_s28  ;;  %s433_s27 = scalar_lea.sflag [#allocation4], %s1034_s23  ;;  %s757_s28 = scalar_lea.vmem %s1171_s14, 128 }
  0x8b   : > { %v366_v37 = vmul.f32 %v365_v26, %v357_v30  ;;  %v385_v38 = vmax.f32 %v384_v31, 0.0  ;;  %v393_v39 = vadd.f32 %v392_v29, %v390_v32  ;;  %v403_v42 = vmul.f32 %v402_v36, %v1044_v0  ;;  %p758_p3 = scmp.ne.s32.totalorder %s1171_s14, %s757_s28 }
  0x8c   : > { %v378_v41 = vmin.f32 %v377_v35, 1.0  ;;  %v410_v43 = vstv %s1131_s26  ;;  %v413_v44 = vstv %s1133_s6  ;;  %v368_v45 = vstv %s1135_s9  ;;  %s763_s26 = scalar_lea.vmem %s762_s29, 256 }
  0x8d   : > { %v386_v46 = vmin.f32 %v385_v38, 1.0  ;;  %v394_v47 = vmax.f32 %v393_v39, 0.0  ;;  %v411_v48 = vmul.f32 %v410_v43, %v1044_v0  ;;  %v406_v49 = vadd.f32 %v405_v40, %v403_v42  ;;  %p759_p10 = pnand %p758_p3, %p1235_p5  ;;  %p765_p9 = scmp.lt.s32.totalorder %s763_s26, %s757_s28 }
  0x8e   : > { %v419_v50 = vstv %s1141_s8  ;;  %v422_v54 = vstv %s1145_s10  ;;  %v340_v55 = vadd.f32 %v339_v34, %v310_v33  ;;  %v369_v56 = vmul.f32 %v368_v45, %v366_v37 }
  0x8f   : > { %v387_v51 = vmul.f32 %v386_v46, %v378_v41  ;;  %v395_v52 = vmin.f32 %v394_v47, 1.0  ;;  %v414_v53 = vadd.f32 %v413_v44, %v411_v48  ;;  %v407_v57 = vmax.f32 %v406_v49, 0.0  ;;  %p760_p1 = pneg %p759_p10  ;;  %p766_p13 = por %p765_p9, %p764_p6 }
  0x90   : > { %v420_v58 = vmul.f32 %v419_v50, %v1044_v0  ;;  %v398_v60 = vstv %s1150_s11  ;;  %v370_v2 = vadd.f32 %v369_v56, %v340_v55  ;;  %v428_v7 = vstv %s602_s21 }
  0x91   : > { %v396_v59 = vmul.f32 %v395_v52, %v387_v51  ;;  %v415_v61 = vmax.f32 %v414_v53, 0.0  ;;  %v408_v62 = vmin.f32 %v407_v57, 1.0  ;;  %p767_p12 = pnand %p766_p13, %p760_p1 }
  0x92   : > { %v423_v63 = vadd.f32 %v422_v54, %v420_v58 }
  0x93   : > { %v416_v1 = vmin.f32 %v415_v61, 1.0  ;;  %v399_v3 = vmul.f32 %v398_v60, %v396_v59 }
  0x94   : > { %v424_v4 = vmax.f32 %v423_v63, 0.0 }
  0x95   : > { %v417_v5 = vmul.f32 %v416_v1, %v408_v62  ;;  %v400_v8 = vadd.f32 %v399_v3, %v370_v2 }
  0x96   : > { %v425_v6 = vmin.f32 %v424_v4, 1.0 }
  0x98   : > { %v426_v9 = vmul.f32 %v425_v6, %v417_v5 }
  0x9a   : > { %v429_v0 = vmul.f32 %v428_v7, %v426_v9 }
  0x9c   : > { %v430_v10 = vadd.f32 %v429_v0, %v400_v8 }
  0x9e   : > { %431 = vst [vmem:[%s250_s13] sm:$0xff] %v430_v10 }
  0x9f   : > { %770 = shalt.err (!%p767_p12)
}
  0xa0   : > { %s771_s23 = scalar_lea.hbm %s1169_s25, 128  ;;  %s775_s8 = scalar_lea.hbm %s1217_s4, 256 }
  0xa1   : > { %p772_p2 = scmp.ne.s32.totalorder %s1169_s25, %s771_s23  ;;  %p776_p7 = scmp.lt.u32.totalorder %s1169_s25, %s1217_s4 }
  0xa2   : > { %p777_p11 = scmp.lt.u32.totalorder %s775_s8, %s771_s23  ;;  %p779_p3 = scmp.lt.u32.totalorder %s771_s23, %s1169_s25 }
  0xa3   : > { %p773_p0 = pnand %p772_p2, %p1235_p5 }
  0xa4   : > { %p778_p8 = por %p777_p11, %p776_p7 }
  0xa5   : > { %p774_p4 = pneg %p773_p0 }
  0xa6   : > { %p780_p10 = por %p779_p3, %p778_p8 }
  0xa8   : > { %p781_p1 = pnand %p780_p10, %p774_p4 }
  0xaa   : > { %784 = shalt.err (!%p781_p1)
}
  0xab   : > { %621 = dma.vmem_to_hbm [thread:$0]  (%p1235_p5), %s1171_s14, 128, %s1169_s25, %s433_s27  }
  0xac PF: > { %s458_s21 = sand.u32 1, %s823_s15   ;;  %p1236_p6 = scmp.ne.s32.totalorder %s1222_s22, 0 }
  0xad   : > { %p1237_p9 = scmp.ge.s32.totalorder %s835_s18, 2  ;;  %s459_s12 = scalar_lea.sflag [#allocation4], %s458_s21 }
  0xaf   : > { %p638_p13 = pnand %p1237_p9, %p1236_p6 }
  0xb1   : > { %818 = dma.done.wait (!%p638_p13), %s459_s12, 128  }
  0xb2   : > { %820 = vsyncadd (!%p638_p13), %s459_s12, 4294967168  ;;  %p20_p12 = scmp.ge.s32.totalorder %s929_s5, 4   ;;  %s1238_s15 = smov %s827_s16 }
  0xb3   : > { %s1239_s16 = smov %s831_s17  ;;  %s1240_s17 = smov %s973_s30 }
  0xb4   : > { %s1241_s18 = smov %s929_s5  ;;  %22 = sbr.rel (!%p20_p12) target bundleno = 8 (0x8), region = 95 }
  0xbb   :  { %464 = vsyncpa [#allocation3], 1 }
  0xbc   :  { %466 = vsyncpa [#allocation3 + $0x1], 1 }
  0xbd   :  { %467 = vsyncpa [#allocation4], 1 }
  0xbe   :  { %469 = vsyncpa [#allocation4 + $0x1], 1 }
  0xbf   :  { %470 = vsyncpa [#allocation5], 1 }
  0xc0   :  { %472 = vsyncpa [#allocation5 + $0x1], 1 }
  0xc1   :  { %473 = vsyncpa [#allocation6], 1 }
  0xc2   :  { %475 = vsyncpa [#allocation6 + $0x1], 1 }
  0xc3   :  { %476 = vsyncpa [#allocation9], 1 }

</bundles_post_ra>
